<compile_context>
chip_gen: v5e
topology: v5e:2x2
jax: 0.10.0
libtpu: 0.0.40
codegen_flags: <defaults>
</compile_context>

<pallas_src>
import jax
import jax.numpy as jnp
from jax.experimental import pallas as pl
from jax.experimental.pallas import tpu as pltpu


def _round_up(n, m):
    return ((n + m - 1) // m) * m


def _mlp_kernel(x_ref, w1_ref, b1_ref, w2_ref, b2_ref, w3_ref, b3_ref, o_ref):
    """One batch tile of the 3-layer MLP.

    x_ref  : (TM, E)  compute dtype (bf16 by default)
    w1_ref : (E, 64)  compute dtype      b1_ref : (1, 64) f32
    w2_ref : (64, 64) compute dtype      b2_ref : (1, 64) f32
    w3_ref : (1, 64)  f32 (row form of the (64, 1) weight)
    b3_ref : (1, 1)   f32 scalar in SMEM
    o_ref  : (TM, 1)  f32
    """
    x = x_ref[...]

    # Layer 1: Linear(E -> 64) + ReLU.  MXU matmul, f32 accumulation,
    # elementwise math kept in f32.
    h1 = jnp.dot(x, w1_ref[...], preferred_element_type=jnp.float32) + b1_ref[...]
    h1 = jnp.maximum(h1, 0.0).astype(x.dtype)

    # Layer 2: Linear(64 -> 64) + ReLU.
    h2 = jnp.dot(h1, w2_ref[...], preferred_element_type=jnp.float32) + b2_ref[...]
    h2 = jnp.maximum(h2, 0.0)

    # Layer 3: Linear(64 -> 1).  Use VPU multiply + cross-lane sum instead of a
    # wasteful N=1 MXU matmul; bias comes from an SMEM scalar.
    out = jnp.sum(h2 * w3_ref[...], axis=-1, keepdims=True) + b3_ref[0, 0]
    o_ref[...] = out.astype(o_ref.dtype)


def _mlp_pallas_2d(x2, params, *, tm_max=1024, compute_dtype=jnp.bfloat16):
    """Apply the MLP to x2 of shape [B, E] -> [B, 1]."""
    w1, b1, w2, b2, w3, b3 = params
    B, E = x2.shape
    H = w1.shape[1]  # 64

    # Batch tile: multiple of 8 (sublane packing), capped at tm_max so the
    # double-buffered VMEM footprint stays ~1 MiB (safe even on v7x's 64 MiB).
    TM = min(tm_max, _round_up(B, 8))
    B_pad = _round_up(B, TM)
    if B_pad != B:
        x2 = jnp.pad(x2, ((0, B_pad - B), (0, 0)))

    x_c = x2.astype(compute_dtype)
    w1_c = w1.astype(compute_dtype)
    w2_c = w2.astype(compute_dtype)
    b1_r = b1.reshape(1, H).astype(jnp.float32)
    b2_r = b2.reshape(1, H).astype(jnp.float32)
    w3_r = w3.reshape(1, H).astype(jnp.float32)
    b3_s = b3.reshape(1, 1).astype(jnp.float32)

    grid = (B_pad // TM,)

    out = pl.pallas_call(
        _mlp_kernel,
        out_shape=jax.ShapeDtypeStruct((B_pad, 1), jnp.float32),
        grid=grid,
        in_specs=[
            # x: one (TM, E) tile per grid step -> pipelined (double-buffered) DMA.
            pl.BlockSpec((TM, E), lambda i: (i, 0)),
            # Weights/biases: constant index_map -> fetched once, VMEM resident.
            pl.BlockSpec((E, H), lambda i: (0, 0)),
            pl.BlockSpec((1, H), lambda i: (0, 0)),
            pl.BlockSpec((H, H), lambda i: (0, 0)),
            pl.BlockSpec((1, H), lambda i: (0, 0)),
            pl.BlockSpec((1, H), lambda i: (0, 0)),
            # Scalar bias of the last layer lives in SMEM.
            pl.BlockSpec(memory_space=pltpu.SMEM),
        ],
        out_specs=pl.BlockSpec((TM, 1), lambda i: (i, 0)),
        compiler_params=pltpu.CompilerParams(
            # Batch tiles are independent: shard grid steps across both
            # TensorCores on v7x (no-op on v5e/v6e).
            dimension_semantics=("parallel",),
        ),
    )(x_c, w1_c, b1_r, w2_c, b2_r, w3_r, b3_s)

    return out[:B]


def model_forward(x, params, *, tm_max=1024, compute_dtype=jnp.bfloat16):
    """Equivalent of Model.forward(input, return_vec=False): apply the lazily
    built Sequential(Linear(E,64), ReLU, Linear(64,64), ReLU, Linear(64,1))
    along the last dimension of x."""
    lead = x.shape[:-1]
    E = x.shape[-1]
    out = _mlp_pallas_2d(x.reshape(-1, E), params,
                         tm_max=tm_max, compute_dtype=compute_dtype)
    return out.reshape(*lead, 1)


def init_params(key, embed_dim, hidden=64):
    """torch.nn.Linear-style init (uniform +/- 1/sqrt(fan_in) for W and b)."""
    def linear(key, fan_in, fan_out):
        kw, kb = jax.random.split(key)
        bound = 1.0 / jnp.sqrt(fan_in)
        w = jax.random.uniform(kw, (fan_in, fan_out), jnp.float32, -bound, bound)
        b = jax.random.uniform(kb, (fan_out,), jnp.float32, -bound, bound)
        return w, b

    k1, k2, k3 = jax.random.split(key, 3)
    w1, b1 = linear(k1, embed_dim, hidden)
    w2, b2 = linear(k2, hidden, hidden)
    w3, b3 = linear(k3, hidden, 1)
    return (w1, b1, w2, b2, w3, b3)


def reference_forward(x, params):
    """Pure-f32 reference matching the PyTorch module semantics."""
    w1, b1, w2, b2, w3, b3 = params
    h1 = jnp.maximum(x @ w1 + b1, 0.0)
    h2 = jnp.maximum(h1 @ w2 + b2, 0.0)
    return h2 @ w3 + b3


def reference_forward_matched(x, params, compute_dtype):
    """JAX reference using the same bf16-operand / f32-accumulate recipe as the kernel."""
    w1, b1, w2, b2, w3, b3 = params
    xc = x.astype(compute_dtype)
    h1 = jnp.dot(xc, w1.astype(compute_dtype),
                 preferred_element_type=jnp.float32) + b1
    h1 = jnp.maximum(h1, 0.0).astype(compute_dtype)
    h2 = jnp.dot(h1, w2.astype(compute_dtype),
                 preferred_element_type=jnp.float32) + b2
    h2 = jnp.maximum(h2, 0.0)
    return jnp.sum(h2 * w3.reshape(1, -1), axis=-1, keepdims=True) + b3


if __name__ == "__main__":
    key = jax.random.PRNGKey(0)
    k_x, k_p = jax.random.split(key)

    B, embed_dim = 8, 32               # small shapes consistent with the module
    x = jax.random.normal(k_x, (B, embed_dim), jnp.float32)
    params = init_params(k_p, embed_dim)

    fwd = jax.jit(lambda xx: model_forward(xx, params))
    out = jax.block_until_ready(fwd(x))
    assert out.shape == (B, 1)

    ref_matched = reference_forward_matched(x, params, jnp.bfloat16)
    ref_f32 = reference_forward(x, params)
    assert jnp.allclose(out, ref_matched, atol=1e-3, rtol=1e-3), (
        "max|diff| vs matched ref = %e" % float(jnp.max(jnp.abs(out - ref_matched))))
    assert jnp.allclose(out, ref_f32, atol=1e-1, rtol=1e-1), (
        "max|diff| vs f32 ref = %e" % float(jnp.max(jnp.abs(out - ref_f32))))

    print("KERNEL_OK")
</pallas_src>

<mosaic_0001>
module attributes {stable_mosaic.version = 11 : i64} {
  func.func @_mlp_kernel(%arg0: i32, %arg1: memref<8x32xbf16, #tpu.memory_space<vmem>>, %arg2: memref<32x64xbf16, #tpu.memory_space<vmem>>, %arg3: memref<1x64xf32, #tpu.memory_space<vmem>>, %arg4: memref<64x64xbf16, #tpu.memory_space<vmem>>, %arg5: memref<1x64xf32, #tpu.memory_space<vmem>>, %arg6: memref<1x64xf32, #tpu.memory_space<vmem>>, %arg7: memref<1x1xf32, #tpu.memory_space<smem>>, %arg8: memref<8x1xf32, #tpu.memory_space<vmem>>) attributes {dimension_semantics = [#tpu.dimension_semantics<parallel>], iteration_bounds = array<i64: 1>, scalar_prefetch = 0 : i64, scratch_operands = 0 : i64, tpu.core_type = #tpu.core_type<tc>, window_params = [{transform_indices = @transform_0, window_bounds = array<i64: 8, 32>}, {pipeline_mode = #tpu.pipeline_mode<synchronous>, transform_indices = @transform_1, window_bounds = array<i64: 32, 64>}, {pipeline_mode = #tpu.pipeline_mode<synchronous>, transform_indices = @transform_2, window_bounds = array<i64: 1, 64>}, {pipeline_mode = #tpu.pipeline_mode<synchronous>, transform_indices = @transform_3, window_bounds = array<i64: 64, 64>}, {pipeline_mode = #tpu.pipeline_mode<synchronous>, transform_indices = @transform_4, window_bounds = array<i64: 1, 64>}, {pipeline_mode = #tpu.pipeline_mode<synchronous>, transform_indices = @transform_5, window_bounds = array<i64: 1, 64>}, {transform_indices = @transform_6, window_bounds = array<i64: 1, 1>}, {transform_indices = @transform_7, window_bounds = array<i64: 8, 1>}]} {
    %c0 = arith.constant 0 : index
    %c0_0 = arith.constant 0 : index
    %0 = vector.load %arg1[%c0, %c0_0] : memref<8x32xbf16, #tpu.memory_space<vmem>>, vector<8x32xbf16>
    %c0_1 = arith.constant 0 : index
    %c0_2 = arith.constant 0 : index
    %1 = vector.load %arg2[%c0_1, %c0_2] : memref<32x64xbf16, #tpu.memory_space<vmem>>, vector<32x64xbf16>
    %cst = arith.constant dense<0.000000e+00> : vector<8x64xf32>
    %2 = tpu.matmul %0, %1, %cst {dimension_numbers = #tpu.dot_dimension_numbers<[1], [0], [0], [1], [0, 0, 1, 1], [], []>} : vector<8x32xbf16>, vector<32x64xbf16>, vector<8x64xf32> -> vector<8x64xf32>
    %c0_3 = arith.constant 0 : index
    %c0_4 = arith.constant 0 : index
    %3 = vector.load %arg3[%c0_3, %c0_4] : memref<1x64xf32, #tpu.memory_space<vmem>>, vector<1x64xf32>
    %4 = vector.broadcast %3 : vector<1x64xf32> to vector<8x64xf32>
    %5 = arith.addf %2, %4 : vector<8x64xf32>
    %cst_5 = arith.constant 0.000000e+00 : f32
    %6 = vector.broadcast %cst_5 : f32 to vector<8x64xf32>
    %7 = arith.maximumf %5, %6 : vector<8x64xf32>
    %8 = arith.truncf %7 : vector<8x64xf32> to vector<8x64xbf16>
    %c0_6 = arith.constant 0 : index
    %c0_7 = arith.constant 0 : index
    %9 = vector.load %arg4[%c0_6, %c0_7] : memref<64x64xbf16, #tpu.memory_space<vmem>>, vector<64x64xbf16>
    %cst_8 = arith.constant dense<0.000000e+00> : vector<8x64xf32>
    %10 = tpu.matmul %8, %9, %cst_8 {dimension_numbers = #tpu.dot_dimension_numbers<[1], [0], [0], [1], [0, 0, 1, 1], [], []>} : vector<8x64xbf16>, vector<64x64xbf16>, vector<8x64xf32> -> vector<8x64xf32>
    %c0_9 = arith.constant 0 : index
    %c0_10 = arith.constant 0 : index
    %11 = vector.load %arg5[%c0_9, %c0_10] : memref<1x64xf32, #tpu.memory_space<vmem>>, vector<1x64xf32>
    %12 = vector.broadcast %11 : vector<1x64xf32> to vector<8x64xf32>
    %13 = arith.addf %10, %12 : vector<8x64xf32>
    %cst_11 = arith.constant 0.000000e+00 : f32
    %14 = vector.broadcast %cst_11 : f32 to vector<8x64xf32>
    %15 = arith.maximumf %13, %14 : vector<8x64xf32>
    %c0_12 = arith.constant 0 : index
    %c0_13 = arith.constant 0 : index
    %16 = vector.load %arg6[%c0_12, %c0_13] : memref<1x64xf32, #tpu.memory_space<vmem>>, vector<1x64xf32>
    %17 = vector.broadcast %16 : vector<1x64xf32> to vector<8x64xf32>
    %18 = arith.mulf %15, %17 : vector<8x64xf32>
    %cst_14 = arith.constant dense<0.000000e+00> : vector<8xf32>
    %19 = vector.multi_reduction <add>, %18, %cst_14 [1] : vector<8x64xf32> to vector<8xf32>
    %20 = vector.shape_cast %19 : vector<8xf32> to vector<8x1xf32>
    %c0_15 = arith.constant 0 : index
    %c0_16 = arith.constant 0 : index
    %21 = memref.load %arg7[%c0_15, %c0_16] : memref<1x1xf32, #tpu.memory_space<smem>>
    %22 = vector.broadcast %21 : f32 to vector<8x1xf32>
    %23 = arith.addf %20, %22 : vector<8x1xf32>
    %c0_17 = arith.constant 0 : index
    %c0_18 = arith.constant 0 : index
    %24 = vector.load %arg8[%c0_17, %c0_18] : memref<8x1xf32, #tpu.memory_space<vmem>>, vector<8x1xf32>
    tpu.vector_store %arg8[%c0_17, %c0_18], %23 {strides = array<i32>} : memref<8x1xf32, #tpu.memory_space<vmem>>, vector<8x1xf32>,
    return
  }
  func.func @transform_0(%arg0: i32) -> (i32, i32) {
    %c0_i32 = arith.constant 0 : i32
    %c0_i32_0 = arith.constant 0 : i32
    return %arg0, %c0_i32 : i32, i32
  }
  func.func @transform_1(%arg0: i32) -> (i32, i32) {
    %c0_i32 = arith.constant 0 : i32
    %c0_i32_0 = arith.constant 0 : i32
    %c0_i32_1 = arith.constant 0 : i32
    return %c0_i32, %c0_i32_0 : i32, i32
  }
  func.func @transform_2(%arg0: i32) -> (i32, i32) {
    %c0_i32 = arith.constant 0 : i32
    %c0_i32_0 = arith.constant 0 : i32
    %c0_i32_1 = arith.constant 0 : i32
    return %c0_i32, %c0_i32_0 : i32, i32
  }
  func.func @transform_3(%arg0: i32) -> (i32, i32) {
    %c0_i32 = arith.constant 0 : i32
    %c0_i32_0 = arith.constant 0 : i32
    %c0_i32_1 = arith.constant 0 : i32
    return %c0_i32, %c0_i32_0 : i32, i32
  }
  func.func @transform_4(%arg0: i32) -> (i32, i32) {
    %c0_i32 = arith.constant 0 : i32
    %c0_i32_0 = arith.constant 0 : i32
    %c0_i32_1 = arith.constant 0 : i32
    return %c0_i32, %c0_i32_0 : i32, i32
  }
  func.func @transform_5(%arg0: i32) -> (i32, i32) {
    %c0_i32 = arith.constant 0 : i32
    %c0_i32_0 = arith.constant 0 : i32
    %c0_i32_1 = arith.constant 0 : i32
    return %c0_i32, %c0_i32_0 : i32, i32
  }
  func.func @transform_6(%arg0: i32) -> (i32, i32) {
    %c0_i32 = arith.constant 0 : i32
    %c0_i32_0 = arith.constant 0 : i32
    %c0_i32_1 = arith.constant 0 : i32
    return %c0_i32, %c0_i32_0 : i32, i32
  }
  func.func @transform_7(%arg0: i32) -> (i32, i32) {
    %c0_i32 = arith.constant 0 : i32
    %c0_i32_0 = arith.constant 0 : i32
    return %arg0, %c0_i32 : i32, i32
  }
}

</mosaic_0001>

<bundles_post_ra>
// kernel: _lambda_.1
= control target key start
LH: loop header
LB: loop body
LE: loop exit
PB: predicated region body
PF: predicated region fallthrough
CT: control target
= control target key end

     0   :  { %13 = vsyncpa [#allocation4], 0  ;;  %s415_s0 = inlined_call_operand.vmem [shape: bf16[8,32], index: 0, kind: input, shape index: {}]   ;;  %s416_s1 = inlined_call_operand.vmem [shape: bf16[32,64], index: 1, kind: input, shape index: {}]   ;;  %s417_s2 = inlined_call_operand.hbm [shape: f32[1,64], index: 2, kind: input, shape index: {}]   ;;  %s418_s3 = inlined_call_operand.hbm [shape: bf16[64,64], index: 3, kind: input, shape index: {}]   ;;  %s419_s4 = inlined_call_operand.hbm [shape: f32[1,64], index: 4, kind: input, shape index: {}]   ;;  %s420_s5 = inlined_call_operand.hbm [shape: f32[1,64], index: 5, kind: input, shape index: {}]   ;;  %s421_s6 = inlined_call_operand.<no memory space> [shape: f32[1,1], index: 6, kind: input, shape index: {}]   ;;  %s422_s7 = inlined_call_operand.vmem [shape: f32[8,1], index: 7, kind: output, shape index: {}]  }
   0x1   :  { %14 = vsyncpa [#allocation6], 0  ;;  %s35_s26 = sshll.u32 %s418_s3, 4  ;;  %s36_s26 = int_to_ptr.hbm [resolvable:$true] %s35_s26 }
   0x2   :  { %15 = vsyncpa [#allocation9], 0  ;;  %s342_s27 = smov [#allocation5]   ;;  %s25_s8 = sshll.u32 %s417_s2, 4  ;;  %s26_s8 = int_to_ptr.hbm [resolvable:$true] %s25_s8 }
   0x3   :  { %s37_s28 = sshll.u32 %s342_s27, 4  ;;  %s343_s9 = smov 64   ;;  %s38_s28 = int_to_ptr.vmem [resolvable:$true] %s37_s28 }
   0x4   :  { %s344_s10 = smov 4   ;;  %s345_s11 = smov [#allocation3]  }
   0x5   :  { %43 = dma.hbm_to_vmem [thread:$0]  %s36_s26, 512, %s38_s28, [#allocation6], %s343_s9, %s343_s9, %s344_s10  }
   0x6   :  { %s27_s12 = sshll.u32 %s345_s11, 4  ;;  %s49_s15 = sshll.u32 %s419_s4, 4  ;;  %s28_s12 = int_to_ptr.vmem [resolvable:$true] %s27_s12  ;;  %s50_s15 = int_to_ptr.hbm [resolvable:$true] %s49_s15 }
   0x7   :  { %30 = dma.hbm_to_vmem [thread:$0]  %s26_s8, 16, %s28_s12, [#allocation4]  }
   0x8   :  { %s60_s17 = sshll.u32 %s420_s5, 4  ;;  %s346_s18 = smov [#allocation7]   ;;  %s61_s17 = int_to_ptr.hbm [resolvable:$true] %s60_s17 }
   0x9   :  { %s51_s19 = sshll.u32 %s346_s18, 4  ;;  %s347_s2 = smov [#allocation8]   ;;  %s52_s19 = int_to_ptr.vmem [resolvable:$true] %s51_s19 }
   0xa   :  { %54 = dma.hbm_to_vmem [thread:$0]  %s50_s15, 16, %s52_s19, [#allocation6]  }
   0xb   :  { %s62_s20 = sshll.u32 %s347_s2, 4  ;;  %s63_s20 = int_to_ptr.vmem [resolvable:$true] %s62_s20 }
   0xc   :  { %65 = dma.hbm_to_vmem [thread:$0]  %s61_s17, 16, %s63_s20, [#allocation9]  }
   0xd   :  { %336 = dma.done.wait [#allocation4], 16  }
   0xe   :  { %337 = vsyncadd [#allocation4], 4294967280 }
   0xf   :  { %338 = dma.done.wait [#allocation6], 528  }
  0x10   :  { %339 = vsyncadd [#allocation6], 4294966768 }
  0x11   :  { %340 = dma.done.wait [#allocation9], 16  }
  0x12   :  { %341 = vsyncadd [#allocation9], 4294967280  ;;  %v226_v0 = vld [vmem:[%s416_s1 + $0x8] sm:$0xff]  ;;  %v230_v1 = vld [vmem:[#allocation5 + $0x18] sm:$0xff]  ;;  %vm106_vm0 = vcmask 261120   ;;  %vm161_vm1 = vcmask 523264   ;;  %v188_v21 = vstv %s421_s6 }
  0x13   :  { %116 = vmatpush.bf16.msra.mxu0 %v226_v0  ;;  %v225_v2 = vld [vmem:[%s416_s1] sm:$0xff]  ;;  %169 = vmatpush.bf16.msra.mxu1 %v230_v1  ;;  %v229_v3 = vld [vmem:[#allocation5 + $0x10] sm:$0xff]  ;;  %v228_v5 = vld [vmem:[#allocation5 + $0x8] sm:$0xff]  ;;  %vm190_vm2 = vcmask 7168  }
  0x14   :  { %v85_v4 = vld [vmem:[%s415_s0] sm:$0xf]  ;;  %v239_v16 = vld [vmem:[#allocation8] ss:$0 sm:$0xff] }
  0x15   :  { %v227_v6 = vld [vmem:[#allocation5] sm:$0xff]  ;;  %v237_v7 = vld [vmem:[#allocation3] ss:$0 sm:$0xff] }
  0x16   :  { %v238_v13 = vld [vmem:[#allocation7] ss:$0 sm:$0xff] }
  0x17   :  { %117 = vmatpush.bf16.msra.mxu0 %v225_v2  ;;  %170 = vmatpush.bf16.msra.mxu1 %v229_v3 }
  0x1a   :  { %207 = vmatmul.msk.bf16.vlgmr.msra.gmra.mxu0 %vm106_vm0, %v85_v4 }
  0x1b   :  { %171 = vmatpush.bf16.msra.mxu1 %v228_v5 }
  0x1f   :  { %172 = vmatpush.bf16.msra.mxu1 %v227_v6 }
  0x97   :  { %v119_v8 = vpop.f32.mrf.mxu0 }
  0x98   :  { %v120_v9 = vadd.f32 %v237_v7, %v119_v8 }
  0x9a   :  { %v123_v10 = vmax.f32 %v120_v9, 0.0 }
  0x9c   :  { %v124_v11 = vpack.c.bf16 %v123_v10, %v123_v10 }
  0x9e   :  { %224 = vmatmul.msk.bf16.vlgmr.msra.gmra.mxu1 %vm161_vm1, %v124_v11 }
  0x9f   :  { %v121_v12 = vpop.f32.mrf.mxu0 }
 0x11b   :  { %v174_v14 = vpop.f32.mrf.mxu1 }
 0x11c   :  { %v175_v15 = vadd.f32 %v238_v13, %v174_v14 }
 0x11e   :  { %v178_v17 = vmax.f32 %v175_v15, 0.0 }
 0x120   :  { %v183_v18 = vmul.f32 %v239_v16, %v178_v17 }
 0x122   :  { %v184_v19 = vsel %vm161_vm1, %v183_v18, 0.0 }
 0x123   :  { %v176_v20 = vpop.f32.mrf.mxu1  ;;  %185 = vadd.xlane.f32.xlu0 %v184_v19 }
 0x196   :  { %v186_v22 = vpop.xlane.xlu0 %185 }
 0x197   :  { %v189_v23 = vadd.f32 %v188_v21, %v186_v22 }
 0x199   :  { %191 = vst.msk [vmem:[%s422_s7] sm:$0xff] %vm190_vm2, %v189_v23 }
 0x19a   :  { %196 = vsyncpa [#allocation4], 1 }
 0x19b   :  { %197 = vsyncpa [#allocation6], 1 }
 0x19c   :  { %198 = vsyncpa [#allocation9], 1 }

</bundles_post_ra>
